<compile_context>
chip_gen: v7x
topology: tpu7x:2x2x1
jax: 0.10.0
libtpu: 0.0.40
codegen_flags: <defaults>
</compile_context>

<pallas_src>
import functools

import jax
import jax.numpy as jnp
from jax.experimental import pallas as pl
from jax.experimental.pallas import tpu as pltpu


# --------------------------------- kernel ----------------------------------
def _gated_gemm_kernel(cpad, p_ref, w_ref, b_ref, o_ref, acc_ref):
    """One grid step (n, t, k) of out[n, :, t*TP:(t+1)*TP].

    p_ref   : (1, TK, TP)    bf16  im2col patches (K-major, spatial rows in lanes)
    w_ref   : (2*Cpad, TK)   bf16  [conv | gate] weight rows
    b_ref   : (2*Cpad, 1)    f32   [conv | gate] biases
    o_ref   : (1, Cpad, TP)  bf16  gated output tile (channels-major, lane-dense)
    acc_ref : (2*Cpad, TP)   f32   matmul accumulator (VMEM scratch)
    """
    k = pl.program_id(2)

    @pl.when(k == 0)
    def _init():
        acc_ref[...] = jnp.zeros_like(acc_ref)

    # MXU: (2*Cpad, TK) @ (TK, TP) -> (2*Cpad, TP), f32 accumulation.
    acc_ref[...] += jnp.dot(w_ref[...], p_ref[0],
                            preferred_element_type=jnp.float32)

    @pl.when(k == pl.num_programs(2) - 1)
    def _finalize():
        acc = acc_ref[...] + b_ref[...]          # f32 epilogue (v5e-safe)
        c = acc[:cpad, :]                        # sublane-aligned channel split
        g = acc[cpad:, :]
        o_ref[0] = (c * jax.nn.sigmoid(g)).astype(o_ref.dtype)


# --------------------------------- wrapper ---------------------------------
def _as_pair(v):
    return tuple(v) if isinstance(v, (tuple, list)) else (v, v)


def _round_up(x, m):
    return -(-x // m) * m


def gated_conv2d_pallas(x_nchw, conv_w, conv_b, gate_w, gate_b, stride, padding):
    """conv2d(x) * sigmoid(gate2d(x)); both convs share geometry.  NCHW in/out."""
    N, Cin, H, W = x_nchw.shape
    Cout, _, KH, KW = conv_w.shape
    Sh, Sw = stride
    Ph, Pw = padding
    Ho = (H + 2 * Ph - KH) // Sh + 1
    Wo = (W + 2 * Pw - KW) // Sw + 1
    rows = Ho * Wo
    K = KH * KW * Cin
    Cpad = _round_up(max(Cout, 16), 16)          # bf16 sublane-packed channels

    # ---- generation-aware VMEM budget -------------------------------------
    vmem_cap = 64 << 20                          # conservative (v7x per-core)
    try:
        vmem_cap = int(pltpu.get_tpu_info().vmem_capacity_bytes)
    except Exception:
        pass
    vmem_limit = int(min(vmem_cap * 3 // 4, 64 << 20))   # 64 MiB v5e/v6e, 48 MiB v7x

    # ---- K tiling: keep the resident weight block modest -------------------
    w_row_bytes = 2 * Cpad * 2                   # one K column of [conv|gate], bf16
    tk_limit = max(128, min(4096, ((2 << 20) // w_row_bytes) // 128 * 128))
    if _round_up(K, 16) <= tk_limit:
        TK, n_k = _round_up(K, 16), 1            # single K step, sublane-padded
    else:
        TK = tk_limit                            # multiple of 128
        n_k = pl.cdiv(K, TK)
    Kpad = TK * n_k

    # ---- row tiling from the real per-step footprint ----------------------
    w_bufs = 1 if n_k == 1 else 2
    resident = w_bufs * (2 * Cpad * TK * 2) + 2 * Cpad * 4
    per_row = (2 * TK * 2           # patch block, double-buffered, bf16
               + 2 * Cpad * 2       # output block, double-buffered, bf16
               + 2 * (2 * Cpad * 4))  # f32 accumulator + epilogue temporaries
    budget = max(1 << 20, vmem_limit - resident - (4 << 20))
    TP = 1024                                    # prefer 256-1024 rows / step
    while TP > 128 and TP * per_row > budget:
        TP //= 2
    while TP > 128 and pl.cdiv(rows, TP) < 2:    # >= 2 row tiles per image
        TP //= 2
    n_t = pl.cdiv(rows, TP)
    rows_pad = n_t * TP

    # ---- XLA-side layout plumbing: halo pad + im2col (K-major, rows-minor) --
    x = jnp.pad(x_nchw, ((0, 0), (0, 0), (Ph, Ph), (Pw, Pw)))
    taps = []
    for kh in range(KH):                         # static, small
        for kw in range(KW):
            taps.append(x[:, :, kh:kh + Sh * (Ho - 1) + 1:Sh,
                                kw:kw + Sw * (Wo - 1) + 1:Sw])   # (N, Cin, Ho, Wo)
    patches = (jnp.stack(taps, axis=1)           # (N, KH*KW, Cin, Ho, Wo)
               .astype(jnp.bfloat16)
               .reshape(N, K, rows))             # K order = (kh, kw, cin)
    patches = jnp.pad(patches, ((0, 0), (0, Kpad - K), (0, rows_pad - rows)))

    # ---- weights: OIHW -> (Cout, K) with matching K order, pad, concat -----
    def prep_w(w):
        w2 = jnp.transpose(w, (0, 2, 3, 1)).reshape(Cout, K).astype(jnp.float32)
        return jnp.pad(w2, ((0, Cpad - Cout), (0, Kpad - K)))

    def prep_b(b):
        return jnp.pad(b.astype(jnp.float32), (0, Cpad - Cout))

    w_cat = jnp.concatenate([prep_w(conv_w), prep_w(gate_w)],
                            axis=0).astype(jnp.bfloat16)          # (2*Cpad, Kpad)
    b_cat = jnp.concatenate([prep_b(conv_b), prep_b(gate_b)]
                            ).reshape(2 * Cpad, 1)                # (2*Cpad, 1) f32

    kernel = functools.partial(_gated_gemm_kernel, Cpad)
    cost = pl.CostEstimate(
        flops=2 * N * rows_pad * Kpad * 2 * Cpad,
        transcendentals=N * rows_pad * Cpad,
        bytes_accessed=(N * Kpad * rows_pad * 2 + 2 * Cpad * Kpad * 2
                        + 2 * Cpad * 4 + N * Cpad * rows_pad * 2))

    def _run(single_buffer_consts):
        const_pm = ({"pipeline_mode": pl.Buffered(1)}
                    if single_buffer_consts else {})
        w_pm = const_pm if n_k == 1 else {}      # weights re-fetched only if K-tiled
        in_specs = [
            pl.BlockSpec((1, TK, TP), lambda n, t, k: (n, k, t)),          # patches
            pl.BlockSpec((2 * Cpad, TK), lambda n, t, k: (0, k), **w_pm),  # weights
            pl.BlockSpec((2 * Cpad, 1), lambda n, t, k: (0, 0), **const_pm),  # bias
        ]
        return pl.pallas_call(
            kernel,
            out_shape=jax.ShapeDtypeStruct((N, Cpad, rows_pad), jnp.bfloat16),
            grid=(N, n_t, n_k),
            in_specs=in_specs,
            out_specs=pl.BlockSpec((1, Cpad, TP), lambda n, t, k: (n, 0, t)),
            scratch_shapes=[pltpu.VMEM((2 * Cpad, TP), jnp.float32)],
            compiler_params=pltpu.CompilerParams(
                dimension_semantics=("parallel", "parallel", "arbitrary"),
                vmem_limit_bytes=vmem_limit),
            cost_estimate=cost,
        )(patches, w_cat, b_cat)

    try:
        out = _run(True)
    except Exception:        # pipeline_mode unsupported in this jax build
        out = _run(False)

    # Output is already NCHW-flat: cheap slice + reshape, no transpose pass.
    out = out[:, :Cout, :rows].reshape(N, Cout, Ho, Wo)
    return out.astype(x_nchw.dtype)


# --------------------------------- module ----------------------------------
def _init_conv_params(key, in_ch, out_ch, kh, kw):
    """PyTorch-style Conv2d init: U(-1/sqrt(fan_in), +1/sqrt(fan_in))."""
    fan_in = in_ch * kh * kw
    bound = 1.0 / (fan_in ** 0.5)
    kw_key, kb_key = jax.random.split(key)
    w = jax.random.uniform(kw_key, (out_ch, in_ch, kh, kw), jnp.float32, -bound, bound)
    b = jax.random.uniform(kb_key, (out_ch,), jnp.float32, -bound, bound)
    return w, b


class GatedConv2dPallas:
    """JAX/Pallas port of GatedConv2d: conv(x) * sigmoid(gate(x)), NCHW I/O."""

    def __init__(self, key, in_channels, out_channels, kernel_size, stride, padding):
        self.kernel_size = _as_pair(kernel_size)
        self.stride = _as_pair(stride)
        self.padding = _as_pair(padding)
        k1, k2 = jax.random.split(key)
        kh, kw = self.kernel_size
        self.conv_w, self.conv_b = _init_conv_params(k1, in_channels, out_channels, kh, kw)
        self.gate_w, self.gate_b = _init_conv_params(k2, in_channels, out_channels, kh, kw)

    def __call__(self, x_nchw):
        return gated_conv2d_pallas(x_nchw, self.conv_w, self.conv_b,
                                   self.gate_w, self.gate_b,
                                   self.stride, self.padding)


# ------------------------- pure-JAX references (XLA) ------------------------
def _conv2d_ref(x, w, b, stride, padding, operand_dtype=None):
    xx = x if operand_dtype is None else x.astype(operand_dtype)
    ww = w if operand_dtype is None else w.astype(operand_dtype)
    out = jax.lax.conv_general_dilated(
        xx, ww, window_strides=stride,
        padding=[(padding[0], padding[0]), (padding[1], padding[1])],
        dimension_numbers=("NCHW", "OIHW", "NCHW"),
        preferred_element_type=jnp.float32)
    return out + b[None, :, None, None].astype(jnp.float32)


if __name__ == "__main__":
    key = jax.random.PRNGKey(0)
    k_x, k_m = jax.random.split(key)
    x = jax.random.normal(k_x, (2, 4, 16, 16), jnp.float32)        # NCHW, like PyTorch

    mod = GatedConv2dPallas(k_m, 4, 8, (3, 3), (1, 1), 1)
    out = jax.block_until_ready(mod(x))
    assert out.shape == (2, 8, 16, 16)

    # bf16-operand / f32-accumulation reference (kernel additionally rounds the
    # final store to bf16 -> tolerance covers one bf16 ulp of the output).
    ref_bf16 = (_conv2d_ref(x, mod.conv_w, mod.conv_b, mod.stride, mod.padding,
                            operand_dtype=jnp.bfloat16)
                * jax.nn.sigmoid(_conv2d_ref(x, mod.gate_w, mod.gate_b,
                                             mod.stride, mod.padding,
                                             operand_dtype=jnp.bfloat16)))
    assert jnp.allclose(out, ref_bf16, atol=1e-2, rtol=1e-2), "gated conv mismatch (bf16 ref)"

    # Loose sanity check vs full-f32 reference (budget = bf16 rounding).
    ref_f32 = (_conv2d_ref(x, mod.conv_w, mod.conv_b, mod.stride, mod.padding)
               * jax.nn.sigmoid(_conv2d_ref(x, mod.gate_w, mod.gate_b,
                                            mod.stride, mod.padding)))
    assert jnp.allclose(out, ref_f32, atol=1e-1, rtol=1e-1), "gated conv mismatch (f32 ref)"

    print("KERNEL_OK")
</pallas_src>

<mosaic_0001>
module attributes {stable_mosaic.version = 11 : i64} {
  func.func @_gated_gemm_kernel(%arg0: i32, %arg1: i32, %arg2: i32, %arg3: memref<1x48x128xbf16, #tpu.memory_space<vmem>>, %arg4: memref<32x48xbf16, #tpu.memory_space<vmem>>, %arg5: memref<32x1xf32, #tpu.memory_space<vmem>>, %arg6: memref<1x16x128xbf16, #tpu.memory_space<vmem>>, %arg7: memref<32x128xf32, #tpu.memory_space<vmem>>) attributes {dimension_semantics = [#tpu.dimension_semantics<parallel>, #tpu.dimension_semantics<parallel>, #tpu.dimension_semantics<arbitrary>], iteration_bounds = array<i64: 2, 2, 1>, scalar_prefetch = 0 : i64, scratch_operands = 1 : i64, tpu.core_type = #tpu.core_type<tc>, window_params = [{transform_indices = @transform_0, window_bounds = array<i64: 1, 48, 128>}, {pipeline_mode = #tpu.pipeline_mode<synchronous>, transform_indices = @transform_1, window_bounds = array<i64: 32, 48>}, {pipeline_mode = #tpu.pipeline_mode<synchronous>, transform_indices = @transform_2, window_bounds = array<i64: 32, 1>}, {transform_indices = @transform_3, window_bounds = array<i64: 1, 16, 128>}]} {
    %c0_i32 = arith.constant 0 : i32
    %0 = arith.cmpi eq, %arg2, %c0_i32 : i32
    %1 = arith.extui %0 : i1 to i32
    %c0_i32_0 = arith.constant 0 : i32
    %2 = arith.cmpi ne, %1, %c0_i32_0 : i32
    scf.if %2 {
      %cst_11 = arith.constant 0.000000e+00 : f32
      %13 = vector.broadcast %cst_11 : f32 to vector<32x128xf32>
      %c0_12 = arith.constant 0 : index
      %c0_13 = arith.constant 0 : index
      %14 = vector.load %arg7[%c0_12, %c0_13] : memref<32x128xf32, #tpu.memory_space<vmem>>, vector<32x128xf32>
      tpu.vector_store %arg7[%c0_12, %c0_13], %13 {strides = array<i32>} : memref<32x128xf32, #tpu.memory_space<vmem>>, vector<32x128xf32>,
    } else {
    }
    %c0 = arith.constant 0 : index
    %c0_1 = arith.constant 0 : index
    %3 = vector.load %arg7[%c0, %c0_1] : memref<32x128xf32, #tpu.memory_space<vmem>>, vector<32x128xf32>
    %c0_2 = arith.constant 0 : index
    %c0_3 = arith.constant 0 : index
    %4 = vector.load %arg4[%c0_2, %c0_3] : memref<32x48xbf16, #tpu.memory_space<vmem>>, vector<32x48xbf16>
    %c0_4 = arith.constant 0 : index
    %c0_5 = arith.constant 0 : index
    %c0_6 = arith.constant 0 : index
    %5 = vector.load %arg3[%c0_4, %c0_5, %c0_6] : memref<1x48x128xbf16, #tpu.memory_space<vmem>>, vector<1x48x128xbf16>
    %6 = vector.shape_cast %5 : vector<1x48x128xbf16> to vector<48x128xbf16>
    %cst = arith.constant dense<0.000000e+00> : vector<32x128xf32>
    %7 = tpu.matmul %4, %6, %cst {dimension_numbers = #tpu.dot_dimension_numbers<[1], [0], [0], [1], [0, 0, 1, 1], [], []>} : vector<32x48xbf16>, vector<48x128xbf16>, vector<32x128xf32> -> vector<32x128xf32>
    %8 = arith.addf %3, %7 : vector<32x128xf32>
    %c0_7 = arith.constant 0 : index
    %c0_8 = arith.constant 0 : index
    %9 = vector.load %arg7[%c0_7, %c0_8] : memref<32x128xf32, #tpu.memory_space<vmem>>, vector<32x128xf32>
    tpu.vector_store %arg7[%c0_7, %c0_8], %8 {strides = array<i32>} : memref<32x128xf32, #tpu.memory_space<vmem>>, vector<32x128xf32>,
    %c0_i32_9 = arith.constant 0 : i32
    %10 = arith.cmpi eq, %arg2, %c0_i32_9 : i32
    %11 = arith.extui %10 : i1 to i32
    %c0_i32_10 = arith.constant 0 : i32
    %12 = arith.cmpi ne, %11, %c0_i32_10 : i32
    scf.if %12 {
      %c0_11 = arith.constant 0 : index
      %c0_12 = arith.constant 0 : index
      %13 = vector.load %arg7[%c0_11, %c0_12] : memref<32x128xf32, #tpu.memory_space<vmem>>, vector<32x128xf32>
      %c0_13 = arith.constant 0 : index
      %c0_14 = arith.constant 0 : index
      %14 = vector.load %arg5[%c0_13, %c0_14] : memref<32x1xf32, #tpu.memory_space<vmem>>, vector<32x1xf32>
      %15 = vector.broadcast %14 : vector<32x1xf32> to vector<32x128xf32>
      %16 = arith.addf %13, %15 : vector<32x128xf32>
      %17 = vector.extract_strided_slice %16 {offsets = [0, 0], sizes = [16, 128], strides = [1, 1]} : vector<32x128xf32> to vector<16x128xf32>
      %18 = vector.extract_strided_slice %16 {offsets = [16, 0], sizes = [16, 128], strides = [1, 1]} : vector<32x128xf32> to vector<16x128xf32>
      %19 = arith.negf %18 : vector<16x128xf32>
      %20 = math.exp %19 : vector<16x128xf32>
      %cst_15 = arith.constant 1.000000e+00 : f32
      %21 = vector.broadcast %cst_15 : f32 to vector<16x128xf32>
      %22 = arith.addf %21, %20 : vector<16x128xf32>
      %23 = arith.divf %21, %22 : vector<16x128xf32>
      %24 = arith.mulf %17, %23 : vector<16x128xf32>
      %25 = arith.truncf %24 : vector<16x128xf32> to vector<16x128xbf16>
      %c0_16 = arith.constant 0 : index
      %c0_17 = arith.constant 0 : index
      %c0_18 = arith.constant 0 : index
      %26 = vector.load %arg6[%c0_16, %c0_17, %c0_18] : memref<1x16x128xbf16, #tpu.memory_space<vmem>>, vector<1x16x128xbf16>
      %27 = vector.shape_cast %26 : vector<1x16x128xbf16> to vector<16x128xbf16>
      %28 = vector.shape_cast %25 : vector<16x128xbf16> to vector<1x16x128xbf16>
      tpu.vector_store %arg6[%c0_16, %c0_17, %c0_18], %28 {strides = array<i32>} : memref<1x16x128xbf16, #tpu.memory_space<vmem>>, vector<1x16x128xbf16>,
    } else {
    }
    return
  }
  func.func @transform_0(%arg0: i32, %arg1: i32, %arg2: i32) -> (i32, i32, i32) {
    %c0_i32 = arith.constant 0 : i32
    return %arg0, %arg2, %arg1 : i32, i32, i32
  }
  func.func @transform_1(%arg0: i32, %arg1: i32, %arg2: i32) -> (i32, i32) {
    %c0_i32 = arith.constant 0 : i32
    %c0_i32_0 = arith.constant 0 : i32
    return %c0_i32, %arg2 : i32, i32
  }
  func.func @transform_2(%arg0: i32, %arg1: i32, %arg2: i32) -> (i32, i32) {
    %c0_i32 = arith.constant 0 : i32
    %c0_i32_0 = arith.constant 0 : i32
    %c0_i32_1 = arith.constant 0 : i32
    return %c0_i32, %c0_i32_0 : i32, i32
  }
  func.func @transform_3(%arg0: i32, %arg1: i32, %arg2: i32) -> (i32, i32, i32) {
    %c0_i32 = arith.constant 0 : i32
    %c0_i32_0 = arith.constant 0 : i32
    return %arg0, %c0_i32, %arg1 : i32, i32, i32
  }
}

module attributes {stable_mosaic.version = 11 : i64} {
  func.func @_gated_gemm_kernel(%arg0: i32, %arg1: i32, %arg2: i32, %arg3: memref<1x48x128xbf16, #tpu.memory_space<vmem>>, %arg4: memref<32x48xbf16, #tpu.memory_space<vmem>>, %arg5: memref<32x1xf32, #tpu.memory_space<vmem>>, %arg6: memref<1x16x128xbf16, #tpu.memory_space<vmem>>, %arg7: memref<32x128xf32, #tpu.memory_space<vmem>>) attributes {dimension_semantics = [#tpu.dimension_semantics<parallel>, #tpu.dimension_semantics<parallel>, #tpu.dimension_semantics<arbitrary>], iteration_bounds = array<i64: 2, 2, 1>, scalar_prefetch = 0 : i64, scratch_operands = 1 : i64, tpu.core_type = #tpu.core_type<tc>, window_params = [{transform_indices = @transform_0, window_bounds = array<i64: 1, 48, 128>}, {transform_indices = @transform_1, window_bounds = array<i64: 32, 48>}, {pipeline_mode = #tpu.pipeline_mode<synchronous>, transform_indices = @transform_2, window_bounds = array<i64: 32, 1>}, {transform_indices = @transform_3, window_bounds = array<i64: 1, 16, 128>}]} {
    %c0_i32 = arith.constant 0 : i32
    %0 = arith.cmpi eq, %arg2, %c0_i32 : i32
    %1 = arith.extui %0 : i1 to i32
    %c0_i32_0 = arith.constant 0 : i32
    %2 = arith.cmpi ne, %1, %c0_i32_0 : i32
    scf.if %2 {
      %cst_11 = arith.constant 0.000000e+00 : f32
      %13 = vector.broadcast %cst_11 : f32 to vector<32x128xf32>
      %c0_12 = arith.constant 0 : index
      %c0_13 = arith.constant 0 : index
      %14 = vector.load %arg7[%c0_12, %c0_13] : memref<32x128xf32, #tpu.memory_space<vmem>>, vector<32x128xf32>
      tpu.vector_store %arg7[%c0_12, %c0_13], %13 {strides = array<i32>} : memref<32x128xf32, #tpu.memory_space<vmem>>, vector<32x128xf32>,
    } else {
    }
    %c0 = arith.constant 0 : index
    %c0_1 = arith.constant 0 : index
    %3 = vector.load %arg7[%c0, %c0_1] : memref<32x128xf32, #tpu.memory_space<vmem>>, vector<32x128xf32>
    %c0_2 = arith.constant 0 : index
    %c0_3 = arith.constant 0 : index
    %4 = vector.load %arg4[%c0_2, %c0_3] : memref<32x48xbf16, #tpu.memory_space<vmem>>, vector<32x48xbf16>
    %c0_4 = arith.constant 0 : index
    %c0_5 = arith.constant 0 : index
    %c0_6 = arith.constant 0 : index
    %5 = vector.load %arg3[%c0_4, %c0_5, %c0_6] : memref<1x48x128xbf16, #tpu.memory_space<vmem>>, vector<1x48x128xbf16>
    %6 = vector.shape_cast %5 : vector<1x48x128xbf16> to vector<48x128xbf16>
    %cst = arith.constant dense<0.000000e+00> : vector<32x128xf32>
    %7 = tpu.matmul %4, %6, %cst {dimension_numbers = #tpu.dot_dimension_numbers<[1], [0], [0], [1], [0, 0, 1, 1], [], []>} : vector<32x48xbf16>, vector<48x128xbf16>, vector<32x128xf32> -> vector<32x128xf32>
    %8 = arith.addf %3, %7 : vector<32x128xf32>
    %c0_7 = arith.constant 0 : index
    %c0_8 = arith.constant 0 : index
    %9 = vector.load %arg7[%c0_7, %c0_8] : memref<32x128xf32, #tpu.memory_space<vmem>>, vector<32x128xf32>
    tpu.vector_store %arg7[%c0_7, %c0_8], %8 {strides = array<i32>} : memref<32x128xf32, #tpu.memory_space<vmem>>, vector<32x128xf32>,
    %c0_i32_9 = arith.constant 0 : i32
    %10 = arith.cmpi eq, %arg2, %c0_i32_9 : i32
    %11 = arith.extui %10 : i1 to i32
    %c0_i32_10 = arith.constant 0 : i32
    %12 = arith.cmpi ne, %11, %c0_i32_10 : i32
    scf.if %12 {
      %c0_11 = arith.constant 0 : index
      %c0_12 = arith.constant 0 : index
      %13 = vector.load %arg7[%c0_11, %c0_12] : memref<32x128xf32, #tpu.memory_space<vmem>>, vector<32x128xf32>
      %c0_13 = arith.constant 0 : index
      %c0_14 = arith.constant 0 : index
      %14 = vector.load %arg5[%c0_13, %c0_14] : memref<32x1xf32, #tpu.memory_space<vmem>>, vector<32x1xf32>
      %15 = vector.broadcast %14 : vector<32x1xf32> to vector<32x128xf32>
      %16 = arith.addf %13, %15 : vector<32x128xf32>
      %17 = vector.extract_strided_slice %16 {offsets = [0, 0], sizes = [16, 128], strides = [1, 1]} : vector<32x128xf32> to vector<16x128xf32>
      %18 = vector.extract_strided_slice %16 {offsets = [16, 0], sizes = [16, 128], strides = [1, 1]} : vector<32x128xf32> to vector<16x128xf32>
      %19 = arith.negf %18 : vector<16x128xf32>
      %20 = math.exp %19 : vector<16x128xf32>
      %cst_15 = arith.constant 1.000000e+00 : f32
      %21 = vector.broadcast %cst_15 : f32 to vector<16x128xf32>
      %22 = arith.addf %21, %20 : vector<16x128xf32>
      %23 = arith.divf %21, %22 : vector<16x128xf32>
      %24 = arith.mulf %17, %23 : vector<16x128xf32>
      %25 = arith.truncf %24 : vector<16x128xf32> to vector<16x128xbf16>
      %c0_16 = arith.constant 0 : index
      %c0_17 = arith.constant 0 : index
      %c0_18 = arith.constant 0 : index
      %26 = vector.load %arg6[%c0_16, %c0_17, %c0_18] : memref<1x16x128xbf16, #tpu.memory_space<vmem>>, vector<1x16x128xbf16>
      %27 = vector.shape_cast %26 : vector<1x16x128xbf16> to vector<16x128xbf16>
      %28 = vector.shape_cast %25 : vector<16x128xbf16> to vector<1x16x128xbf16>
      tpu.vector_store %arg6[%c0_16, %c0_17, %c0_18], %28 {strides = array<i32>} : memref<1x16x128xbf16, #tpu.memory_space<vmem>>, vector<1x16x128xbf16>,
    } else {
    }
    return
  }
  func.func @transform_0(%arg0: i32, %arg1: i32, %arg2: i32) -> (i32, i32, i32) {
    %c0_i32 = arith.constant 0 : i32
    return %arg0, %arg2, %arg1 : i32, i32, i32
  }
  func.func @transform_1(%arg0: i32, %arg1: i32, %arg2: i32) -> (i32, i32) {
    %c0_i32 = arith.constant 0 : i32
    %c0_i32_0 = arith.constant 0 : i32
    return %c0_i32, %arg2 : i32, i32
  }
  func.func @transform_2(%arg0: i32, %arg1: i32, %arg2: i32) -> (i32, i32) {
    %c0_i32 = arith.constant 0 : i32
    %c0_i32_0 = arith.constant 0 : i32
    %c0_i32_1 = arith.constant 0 : i32
    return %c0_i32, %c0_i32_0 : i32, i32
  }
  func.func @transform_3(%arg0: i32, %arg1: i32, %arg2: i32) -> (i32, i32, i32) {
    %c0_i32 = arith.constant 0 : i32
    %c0_i32_0 = arith.constant 0 : i32
    return %arg0, %c0_i32, %arg1 : i32, i32, i32
  }
}

</mosaic_0001>

<bundles_post_ra>
// kernel: tpu_custom_call.1
= control target key start
LH: loop header
LB: loop body
LE: loop exit
PB: predicated region body
PF: predicated region fallthrough
CT: control target
= control target key end

     0   :  { %8 = vsyncpa [#allocation4], 0  ;;  %s1057_s0 = inlined_call_operand.hbm [shape: bf16[2,48,256], index: 0, kind: input, shape index: {}]   ;;  %s1058_s1 = inlined_call_operand.vmem [shape: bf16[32,48], index: 1, kind: input, shape index: {}]   ;;  %s1059_s2 = inlined_call_operand.vmem [shape: f32[32,1], index: 2, kind: input, shape index: {}]   ;;  %s1060_s3 = inlined_call_operand.hbm [shape: bf16[2,16,256], index: 3, kind: output, shape index: {}]  }
   0x1   :  { %10 = vsyncpa [#allocation4 + $0x1], 0 }
   0x2   :  { %11 = vsyncpa [#allocation5], 0 }
   0x3   :  { %13 = vsyncpa [#allocation5 + $0x1], 0  ;;  %s841_s12 = smov 0   ;;  %s843_s13 = smov 0  }
   0x4   :  { %s845_s14 = smov 0   ;;  %s847_s15 = smov 0  }
   0x5   :  { %s849_s16 = smov 0   ;;  %s851_s17 = smov 0  }
   0x6   :  { %s853_s18 = smov 0   ;;  %s855_s19 = smov 0  }
   0x7 LB: > { %s533_s20 = sadd.s32 4294967295, %s810_s19   ;;  %s534_s21 = sadd.s32 4294967294, %s810_s19   ;;  %s810_s19 = sphi %s855_s19, %s19_s19   ;;  %s806_s18 = sphi %s853_s18, %s1075_s18   ;;  %s802_s17 = sphi %s851_s17, %s1074_s17   ;;  %s798_s16 = sphi %s849_s16, %s1073_s16   ;;  %s794_s15 = sphi %s847_s15, %s1072_s15   ;;  %s790_s14 = sphi %s845_s14, %s1071_s14   ;;  %s786_s13 = sphi %s843_s13, %s1070_s13   ;;  %s782_s12 = sphi %s841_s12, %s1069_s12  }
   0x8   : > { %s34_s22 = sadd.s32 1, %s802_s17  ;;  %s38_s23 = sadd.s32 1, %s806_s18 }
   0x9   : > { %p36_p0 = scmp.ge.s32.totalorder %s34_s22, 2  ;;  %s49_s24 = sadd.s32 1, %s790_s14 }
   0xa   : > { %p56_p1 = scmp.ne.s32.totalorder %s790_s14, %s786_s13  ;;  %p57_p2 = scmp.eq.s32.totalorder %s810_s19, 0 }
   0xb   : > { %s1077_s22 = smov (%p36_p0, %s34_s22), 0  ;;  %s1079_s23 = smov (!%p36_p0, %s38_s23), %s806_s18 }
   0xc   : > { %s45_s25 = ssub.s32 %s802_s17, %s1077_s22  ;;  %p894_p3 = por %p57_p2, %p56_p1 }
   0xd   : > { %p40_p4 = scmp.ge.s32.totalorder %s1079_s23, 2  ;;  %p62_p5 = scmp.ne.s32.totalorder %s786_s13, %s782_s12 }
   0xe   : > { %p63_p6 = scmp.eq.s32.totalorder %s533_s20, 0  ;;  %p135_p7 = scmp.eq.s32.totalorder %s533_s20, 3 }
   0xf   : > { %s1081_s23 = smov (%p40_p4, %s1079_s23), 0  ;;  %p141_p10 = scmp.eq.s32.totalorder %s534_s21, 3 }
  0x10   : > { %p902_p8 = por %p63_p6, %p62_p5  ;;  %p906_p9 = por %p135_p7, %p56_p1 }
  0x11   : > { %s42_s29 = ssub.s32 %s806_s18, %s1081_s23  ;;  %p912_p12 = por %p141_p10, %p62_p5 }
  0x12   : > { %s1064_s28 = scalar_select %p906_p9, 1, 0 }
  0x13   : > { %s46_s30 = sor.u32 %s45_s25, %s42_s29  ;;  %p594_p13 = scmp.lt.s32.totalorder %s810_s19, 4 }
  0x14   : > { %p47_p11 = scmp.eq.s32.totalorder %s46_s30, 0  ;;  %s171_s5 = sand.u32 1, %s790_s14  }
  0x15   : > { %s1065_s4 = scalar_select %p912_p12, 1, 0 }
  0x16   : > { %s919_s6 = scalar_select %p47_p11, %s790_s14, %s49_s24  }
  0x17   : > { %s579_s7 = smul.u32 24, %s171_s5  ;;  %p924_p0 = pnand %p594_p13, %p894_p3 }
  0x18   : > { %s580_s8 = smul.u32 12, %s806_s18  ;;  %s936_s26 = scalar_lea.sflag [#allocation4], %s171_s5 }
  0x19   : > { %s175_s11 = scalar_lea.vmem [#allocation3], %s579_s7  ;;  %p684_p2 = pneg %p924_p0 }
  0x1a   : > { %s183_s10 = sadd.s32 %s802_s17, %s580_s8  ;;  %s186_s20 = sshll.u32 %s175_s11, 4  ;;  %s929_s20 = int_to_ptr.vmem [resolvable:$true] %s186_s20 }
  0x1b   : > { %s538_s21 = sshll.u32 %s183_s10, 6  ;;  %s687_s10 = scalar_lea.hbm %s1057_s0, 1536 }
  0x1c   : > { %s934_s24 = scalar_lea.hbm %s1057_s0, %s538_s21 }
  0x1d   : > { %s682_s30 = scalar_lea.hbm %s934_s24, 384  ;;  %p688_p5 = scmp.lt.u32.totalorder %s934_s24, %s1057_s0 }
  0x1e   : > { %p683_p1 = scmp.ne.s32.totalorder %s934_s24, %s682_s30  ;;  %p689_p6 = scmp.lt.u32.totalorder %s687_s10, %s682_s30 }
  0x1f   : > { %p691_p10 = scmp.lt.u32.totalorder %s682_s30, %s934_s24 }
  0x20   : > { %p685_p3 = pnand %p684_p2, %p683_p1  ;;  %p690_p7 = por %p689_p6, %p688_p5 }
  0x22   : > { %p686_p4 = pneg %p685_p3  ;;  %p692_p11 = por %p691_p10, %p690_p7 }
  0x24   : > { %p693_p13 = pnand %p692_p11, %p686_p4 }
  0x26   : > { %696 = shalt.err (!%p693_p13)
}
  0x27   : > { %s697_s5 = scalar_lea.vmem %s929_s20, 384  ;;  %s812_s25 = smov [#allocation3]  }
  0x28   : > { %p698_p1 = scmp.ne.s32.totalorder %s929_s20, %s697_s5  ;;  %s702_s29 = sshll.u32 %s812_s25, 4  ;;  %s703_s29 = int_to_ptr.vmem [resolvable:$false] %s702_s29 }
  0x29   : > { %s704_s7 = scalar_lea.vmem %s703_s29, 768  ;;  %p705_p9 = scmp.lt.s32.totalorder %s929_s20, %s703_s29 }
  0x2a   : > { %p700_p3 = pnand %p698_p1, %p684_p2  ;;  %p706_p5 = scmp.lt.s32.totalorder %s704_s7, %s697_s5 }
  0x2c   : > { %p701_p12 = pneg %p700_p3  ;;  %p707_p6 = por %p706_p5, %p705_p9 }
  0x2e   : > { %p708_p7 = pnand %p707_p6, %p701_p12 }
  0x30   : > { %711 = shalt.err (!%p708_p7)
}
  0x31   : > { %s813_s30 = smov 128   ;;  %s814_s8 = smov 64  }
  0x32   : > { %s815_s10 = smov 4   ;;  %p539_p2 = scmp.ge.s32.totalorder %s810_s19, 1 }
  0x33   : > { %589 = dma.hbm_to_vmem [thread:$0]  (!%p924_p0), %s934_s24, 384, %s929_s20, %s936_s26, %s813_s30, %s814_s8, %s815_s10  }
  0x34   : > { %p194_p4 = scmp.lt.s32.totalorder %s810_s19, 5 }
  0x36   : > { %p195_p10 = pnand %p539_p2, %p194_p4 }
  0x37   : > { %s967_s11 = sand.u32 (!%p195_p10), 1, %s786_s13  }
  0x38   : > { %198 = sbr.rel (%p195_p10) target bundleno = 340 (0x154), region = 32  ;;  %s201_s5 = scalar_lea.sflag (!%p195_p10), [#allocation4], %s967_s11 }
  0x39   : > { %s581_s21 = smul.u32 (!%p195_p10), 24, %s967_s11 }
  0x3b   : > { %s204_s25 = scalar_lea.vmem (!%p195_p10), [#allocation3], %s581_s21 }
  0x3f   : > { %773 = dma.done.wait (%p902_p8), %s201_s5, 384  }
  0x40   : > { %775 = vsyncadd (%p902_p8), %s201_s5, 4294966912  ;;  %v816_v0 = vmov 0   ;;  %v669_v1 = vld [vmem:[%s204_s25] sm:$0xff]   ;;  %v670_v2 = vld [vmem:[%s204_s25 + $0x8] sm:$0xff]   ;;  %vm287_vm0 = vcmask 392192   ;;  %s553_s9 = sshll.u32 %s798_s16, 2 }
  0x41   : > { %667 = vset.pattern.permute.xlu0 %v816_v0  ;;  %668 = vset.pattern.permute.xlu1 %v816_v0  ;;  %v672_v3 = vld [vmem:[%s1058_s1] sm:$0xff]   ;;  %v671_v4 = vld [vmem:[%s204_s25 + $0x10] sm:$0xff]   ;;  %v361_v7 = vld [vmem:[%s1059_s2 + $0x18] sm:$0xff]  ;;  %s540_s25 = sshll.u32 %s967_s11, 3  ;;  %s422_s20 = sadd.s32 %s794_s15, %s553_s9 }
  0x42   : > { %569 = vmatprep.subr.bf16.mxu0 %v669_v1  ;;  %575 = vmatprep.mubr.msk.bf16.mxu0 %vm287_vm0, %v672_v3  ;;  %v360_v5 = vld [vmem:[%s1059_s2 + $0x10] sm:$0xff]  ;;  %v358_v6 = vld [vmem:[%s1059_s2] sm:$0xff]  ;;  %v359_v8 = vld [vmem:[%s1059_s2 + $0x8] sm:$0xff]  ;;  %s230_s24 = scalar_lea.vmem [#allocation6], %s540_s25  ;;  %s554_s27 = sshll.u32 %s422_s20, 6 }
  0x43   : > { %570 = vmatpush3.bf16.msra.mxu0 %v669_v1  ;;  %374 = vperm.xlu0 %667, %v360_v5   ;;  %v673_v9 = vld [vmem:[%s1058_s1 + $0x8] sm:$0xff]   ;;  %s425_s26 = sshll.u32 %s230_s24, 4  ;;  %s1003_s16 = scalar_lea.hbm %s1060_s3, %s554_s27  ;;  %s998_s26 = int_to_ptr.vmem [resolvable:$true] %s425_s26 }
  0x44   : > { %571 = vmatprep.subr.bf16.mxu0 %v670_v2  ;;  %364 = vperm.xlu1 %668, %v358_v6   ;;  %s411_s15 = scalar_lea.sflag [#allocation5], %s967_s11  ;;  %s712_s30 = scalar_lea.vmem %s998_s26, 128 }
  0x45   : > { %p713_p8 = scmp.ne.s32.totalorder %s998_s26, %s712_s30  ;;  %p1067_p9 = scmp.ne.s32.totalorder %s1064_s28, 0 }
  0x46   : > { %s817_s8 = smov [#allocation6]  }
  0x47   : > { %572 = vmatpush3.bf16.msra.mxu0 %v670_v2  ;;  %379 = vperm.xlu0 %667, %v361_v7   ;;  %p714_p12 = pnand %p713_p8, %p1067_p9  ;;  %s716_s10 = sshll.u32 %s817_s8, 4  ;;  %s717_s10 = int_to_ptr.vmem [resolvable:$false] %s716_s10 }
  0x48   : > { %573 = vmatprep.subr.bf16.mxu0 %v671_v4  ;;  %369 = vperm.xlu1 %668, %v359_v8   ;;  %s718_s21 = scalar_lea.vmem %s717_s10, 256  ;;  %p719_p11 = scmp.lt.s32.totalorder %s998_s26, %s717_s10 }
  0x49   : > { %p715_p0 = pneg %p714_p12  ;;  %p720_p13 = scmp.lt.s32.totalorder %s718_s21, %s712_s30 }
  0x4b   : > { %574 = vmatpush3.bf16.msra.mxu0 %v671_v4  ;;  %p721_p1 = por %p720_p13, %p719_p11 }
  0x4d   : > { %p722_p3 = pnand %p721_p1, %p715_p0 }
  0x4e   : > { %576 = vmatmul.mubr.msk.bf16.vlgmr.msra.gmra.mrb[0].mxu0 %vm287_vm0, %v673_v9 }
  0xc2   : > { %v375_v10 = vpop.permute.xlu0 %374 }
  0xc3   : > { %v365_v24 = vpop.permute.xlu1 %364 }
  0xc6   : > { %v380_v14 = vpop.permute.xlu0 %379 }
  0xc7   : > { %v370_v25 = vpop.permute.xlu1 %369 }
 0x121   : > { %v577_v11 = vpop.f32.mrb[0].mxu0 }
 0x122   : > { %v384_v12 = vadd.f32 %v577_v11, %v375_v10  ;;  %v328_v13 = vpop.f32.mrb[1].mxu0 }
 0x123   : > { %v578_v15 = vpop.f32.mrb[2].mxu0  ;;  %v382_v26 = vadd.f32 %v365_v24, %v328_v13 }
 0x124   : > { %v548_v16 = vmul.f32 -1.442695, %v384_v12  ;;  %v385_v17 = vadd.f32 %v578_v15, %v380_v14  ;;  %v331_v18 = vpop.f32.mrb[3].mxu0 }
 0x125   : > { %v383_v29 = vadd.f32 %v370_v25, %v331_v18 }
 0x126   : > { %674 = vpow2.f32 %v548_v16  ;;  %v549_v19 = vmul.f32 -1.442695, %v385_v17 }
 0x128   : > { %676 = vpow2.f32 %v549_v19 }
 0x130   : > { %v675_v20 = vpop.eup %674 }
 0x131   : > { %v392_v21 = vadd.f32 1.0, %v675_v20 }
 0x132   : > { %v677_v22 = vpop.eup %676 }
 0x133   : > { %678 = vrcp.f32 %v392_v21  ;;  %v393_v23 = vadd.f32 1.0, %v677_v22 }
 0x135   : > { %680 = vrcp.f32 %v393_v23 }
 0x13d   : > { %v679_v27 = vpop.eup %678 }
 0x13e   : > { %v398_v28 = vmul.f32 %v679_v27, %v382_v26 }
 0x13f   : > { %v681_v30 = vpop.eup %680 }
 0x140   : > { %v399_v31 = vmul.f32 %v681_v30, %v383_v29 }
 0x142   : > { %v562_v32 = vpack.c.bf16 %v399_v31, %v398_v28 }
 0x144   : > { %563 = vst [vmem:[%s230_s24] sm:$0xff] %v562_v32  }
 0x145   : > { %725 = shalt.err (!%p722_p3)
}
 0x146   : > { %s726_s5 = scalar_lea.hbm %s1003_s16, 128  ;;  %s730_s20 = scalar_lea.hbm %s1060_s3, 512 }
 0x147   : > { %p727_p5 = scmp.ne.s32.totalorder %s1003_s16, %s726_s5  ;;  %p731_p2 = scmp.lt.u32.totalorder %s1003_s16, %s1060_s3 }
 0x148   : > { %p732_p4 = scmp.lt.u32.totalorder %s730_s20, %s726_s5  ;;  %p734_p8 = scmp.lt.u32.totalorder %s726_s5, %s1003_s16 }
 0x149   : > { %p728_p6 = pnand %p727_p5, %p1067_p9 }
 0x14a   : > { %p733_p10 = por %p732_p4, %p731_p2 }
 0x14b   : > { %p729_p7 = pneg %p728_p6 }
 0x14c   : > { %p735_p12 = por %p734_p8, %p733_p10 }
 0x14e   : > { %p736_p0 = pnand %p735_p12, %p729_p7 }
 0x150   : > { %739 = shalt.err (!%p736_p0)
}
 0x151   : > { %s818_s29 = smov 64   ;;  %s819_s7 = smov 128  }
 0x152   : > { %s820_s30 = smov 4  }
 0x153   : > { %584 = dma.vmem_to_hbm [thread:$0]  (%p1067_p9), %s998_s26, 128, %s1003_s16, %s411_s15, %s818_s29, %s819_s7, %s820_s30  }
 0x154 PF: > { %p595_p11 = scmp.ge.s32.totalorder %s810_s19, 2  ;;  %s440_s8 = sand.u32 1, %s782_s12  }
 0x155   : > { %p1068_p13 = scmp.ne.s32.totalorder %s1065_s4, 0  ;;  %s441_s10 = scalar_lea.sflag [#allocation5], %s440_s8 }
 0x157   : > { %p591_p1 = pnand %p595_p11, %p1068_p13 }
 0x159   : > { %777 = dma.done.wait (!%p591_p1), %s441_s10, 128  }
 0x15a   : > { %779 = vsyncadd (!%p591_p1), %s441_s10, 4294967168  ;;  %s19_s19 = sadd.s32 1, %s810_s19   ;;  %s1069_s12 = smov %s786_s13 }
 0x15b   : > { %p16_p3 = scmp.ge.s32.totalorder %s19_s19, 6   ;;  %s1070_s13 = smov %s790_s14 }
 0x15c   : > { %s1071_s14 = smov %s919_s6  ;;  %s1072_s15 = smov %s802_s17 }
 0x15d   : > { %s1073_s16 = smov %s806_s18  ;;  %s1074_s17 = smov %s1077_s22 }
 0x15e   : > { %s1075_s18 = smov %s1081_s23  ;;  %18 = sbr.rel (!%p16_p3) target bundleno = 7 (0x7), region = 88 }
 0x165   :  { %446 = vsyncpa [#allocation4], 1 }
 0x166   :  { %448 = vsyncpa [#allocation4 + $0x1], 1 }
 0x167   :  { %449 = vsyncpa [#allocation5], 1 }
 0x168   :  { %451 = vsyncpa [#allocation5 + $0x1], 1 }

// kernel: tpu_custom_call.1
= control target key start
LH: loop header
LB: loop body
LE: loop exit
PB: predicated region body
PF: predicated region fallthrough
CT: control target
= control target key end

     0   :  { %8 = vsyncpa [#allocation4], 0  ;;  %s1057_s0 = inlined_call_operand.hbm [shape: bf16[2,48,256], index: 0, kind: input, shape index: {}]   ;;  %s1058_s1 = inlined_call_operand.vmem [shape: bf16[32,48], index: 1, kind: input, shape index: {}]   ;;  %s1059_s2 = inlined_call_operand.vmem [shape: f32[32,1], index: 2, kind: input, shape index: {}]   ;;  %s1060_s3 = inlined_call_operand.hbm [shape: bf16[2,16,256], index: 3, kind: output, shape index: {}]  }
   0x1   :  { %10 = vsyncpa [#allocation4 + $0x1], 0 }
   0x2   :  { %11 = vsyncpa [#allocation5], 0 }
   0x3   :  { %13 = vsyncpa [#allocation5 + $0x1], 0  ;;  %s841_s12 = smov 0   ;;  %s843_s13 = smov 0  }
   0x4   :  { %s845_s14 = smov 0   ;;  %s847_s15 = smov 0  }
   0x5   :  { %s849_s16 = smov 0   ;;  %s851_s17 = smov 0  }
   0x6   :  { %s853_s18 = smov 0   ;;  %s855_s19 = smov 0  }
   0x7 LB: > { %s533_s20 = sadd.s32 4294967295, %s810_s19   ;;  %s534_s21 = sadd.s32 4294967294, %s810_s19   ;;  %s810_s19 = sphi %s855_s19, %s19_s19   ;;  %s806_s18 = sphi %s853_s18, %s1075_s18   ;;  %s802_s17 = sphi %s851_s17, %s1074_s17   ;;  %s798_s16 = sphi %s849_s16, %s1073_s16   ;;  %s794_s15 = sphi %s847_s15, %s1072_s15   ;;  %s790_s14 = sphi %s845_s14, %s1071_s14   ;;  %s786_s13 = sphi %s843_s13, %s1070_s13   ;;  %s782_s12 = sphi %s841_s12, %s1069_s12  }
   0x8   : > { %s34_s22 = sadd.s32 1, %s802_s17  ;;  %s38_s23 = sadd.s32 1, %s806_s18 }
   0x9   : > { %p36_p0 = scmp.ge.s32.totalorder %s34_s22, 2  ;;  %s49_s24 = sadd.s32 1, %s790_s14 }
   0xa   : > { %p56_p1 = scmp.ne.s32.totalorder %s790_s14, %s786_s13  ;;  %p57_p2 = scmp.eq.s32.totalorder %s810_s19, 0 }
   0xb   : > { %s1077_s22 = smov (%p36_p0, %s34_s22), 0  ;;  %s1079_s23 = smov (!%p36_p0, %s38_s23), %s806_s18 }
   0xc   : > { %s45_s25 = ssub.s32 %s802_s17, %s1077_s22  ;;  %p894_p3 = por %p57_p2, %p56_p1 }
   0xd   : > { %p40_p4 = scmp.ge.s32.totalorder %s1079_s23, 2  ;;  %p62_p5 = scmp.ne.s32.totalorder %s786_s13, %s782_s12 }
   0xe   : > { %p63_p6 = scmp.eq.s32.totalorder %s533_s20, 0  ;;  %p135_p7 = scmp.eq.s32.totalorder %s533_s20, 3 }
   0xf   : > { %s1081_s23 = smov (%p40_p4, %s1079_s23), 0  ;;  %p141_p10 = scmp.eq.s32.totalorder %s534_s21, 3 }
  0x10   : > { %p902_p8 = por %p63_p6, %p62_p5  ;;  %p906_p9 = por %p135_p7, %p56_p1 }
  0x11   : > { %s42_s29 = ssub.s32 %s806_s18, %s1081_s23  ;;  %p912_p12 = por %p141_p10, %p62_p5 }
  0x12   : > { %s1064_s28 = scalar_select %p906_p9, 1, 0 }
  0x13   : > { %s46_s30 = sor.u32 %s45_s25, %s42_s29  ;;  %p594_p13 = scmp.lt.s32.totalorder %s810_s19, 4 }
  0x14   : > { %p47_p11 = scmp.eq.s32.totalorder %s46_s30, 0  ;;  %s171_s5 = sand.u32 1, %s790_s14  }
  0x15   : > { %s1065_s4 = scalar_select %p912_p12, 1, 0 }
  0x16   : > { %s919_s6 = scalar_select %p47_p11, %s790_s14, %s49_s24  }
  0x17   : > { %s579_s7 = smul.u32 24, %s171_s5  ;;  %p924_p0 = pnand %p594_p13, %p894_p3 }
  0x18   : > { %s580_s8 = smul.u32 12, %s806_s18  ;;  %s936_s26 = scalar_lea.sflag [#allocation4], %s171_s5 }
  0x19   : > { %s175_s11 = scalar_lea.vmem [#allocation3], %s579_s7  ;;  %p684_p2 = pneg %p924_p0 }
  0x1a   : > { %s183_s10 = sadd.s32 %s802_s17, %s580_s8  ;;  %s186_s20 = sshll.u32 %s175_s11, 4  ;;  %s929_s20 = int_to_ptr.vmem [resolvable:$true] %s186_s20 }
  0x1b   : > { %s538_s21 = sshll.u32 %s183_s10, 6  ;;  %s687_s10 = scalar_lea.hbm %s1057_s0, 1536 }
  0x1c   : > { %s934_s24 = scalar_lea.hbm %s1057_s0, %s538_s21 }
  0x1d   : > { %s682_s30 = scalar_lea.hbm %s934_s24, 384  ;;  %p688_p5 = scmp.lt.u32.totalorder %s934_s24, %s1057_s0 }
  0x1e   : > { %p683_p1 = scmp.ne.s32.totalorder %s934_s24, %s682_s30  ;;  %p689_p6 = scmp.lt.u32.totalorder %s687_s10, %s682_s30 }
  0x1f   : > { %p691_p10 = scmp.lt.u32.totalorder %s682_s30, %s934_s24 }
  0x20   : > { %p685_p3 = pnand %p684_p2, %p683_p1  ;;  %p690_p7 = por %p689_p6, %p688_p5 }
  0x22   : > { %p686_p4 = pneg %p685_p3  ;;  %p692_p11 = por %p691_p10, %p690_p7 }
  0x24   : > { %p693_p13 = pnand %p692_p11, %p686_p4 }
  0x26   : > { %696 = shalt.err (!%p693_p13)
}
  0x27   : > { %s697_s5 = scalar_lea.vmem %s929_s20, 384  ;;  %s812_s25 = smov [#allocation3]  }
  0x28   : > { %p698_p1 = scmp.ne.s32.totalorder %s929_s20, %s697_s5  ;;  %s702_s29 = sshll.u32 %s812_s25, 4  ;;  %s703_s29 = int_to_ptr.vmem [resolvable:$false] %s702_s29 }
  0x29   : > { %s704_s7 = scalar_lea.vmem %s703_s29, 768  ;;  %p705_p9 = scmp.lt.s32.totalorder %s929_s20, %s703_s29 }
  0x2a   : > { %p700_p3 = pnand %p698_p1, %p684_p2  ;;  %p706_p5 = scmp.lt.s32.totalorder %s704_s7, %s697_s5 }
  0x2c   : > { %p701_p12 = pneg %p700_p3  ;;  %p707_p6 = por %p706_p5, %p705_p9 }
  0x2e   : > { %p708_p7 = pnand %p707_p6, %p701_p12 }
  0x30   : > { %711 = shalt.err (!%p708_p7)
}
  0x31   : > { %s813_s30 = smov 128   ;;  %s814_s8 = smov 64  }
  0x32   : > { %s815_s10 = smov 4   ;;  %p539_p2 = scmp.ge.s32.totalorder %s810_s19, 1 }
  0x33   : > { %589 = dma.hbm_to_vmem [thread:$0]  (!%p924_p0), %s934_s24, 384, %s929_s20, %s936_s26, %s813_s30, %s814_s8, %s815_s10  }
  0x34   : > { %p194_p4 = scmp.lt.s32.totalorder %s810_s19, 5 }
  0x36   : > { %p195_p10 = pnand %p539_p2, %p194_p4 }
  0x37   : > { %s967_s11 = sand.u32 (!%p195_p10), 1, %s786_s13  }
  0x38   : > { %198 = sbr.rel (%p195_p10) target bundleno = 340 (0x154), region = 32  ;;  %s201_s5 = scalar_lea.sflag (!%p195_p10), [#allocation4], %s967_s11 }
  0x39   : > { %s581_s21 = smul.u32 (!%p195_p10), 24, %s967_s11 }
  0x3b   : > { %s204_s25 = scalar_lea.vmem (!%p195_p10), [#allocation3], %s581_s21 }
  0x3f   : > { %773 = dma.done.wait (%p902_p8), %s201_s5, 384  }
  0x40   : > { %775 = vsyncadd (%p902_p8), %s201_s5, 4294966912  ;;  %v816_v0 = vmov 0   ;;  %v669_v1 = vld [vmem:[%s204_s25] sm:$0xff]   ;;  %v670_v2 = vld [vmem:[%s204_s25 + $0x8] sm:$0xff]   ;;  %vm287_vm0 = vcmask 392192   ;;  %s553_s9 = sshll.u32 %s798_s16, 2 }
  0x41   : > { %667 = vset.pattern.permute.xlu0 %v816_v0  ;;  %668 = vset.pattern.permute.xlu1 %v816_v0  ;;  %v672_v3 = vld [vmem:[%s1058_s1] sm:$0xff]   ;;  %v671_v4 = vld [vmem:[%s204_s25 + $0x10] sm:$0xff]   ;;  %v361_v7 = vld [vmem:[%s1059_s2 + $0x18] sm:$0xff]  ;;  %s540_s25 = sshll.u32 %s967_s11, 3  ;;  %s422_s20 = sadd.s32 %s794_s15, %s553_s9 }
  0x42   : > { %569 = vmatprep.subr.bf16.mxu0 %v669_v1  ;;  %575 = vmatprep.mubr.msk.bf16.mxu0 %vm287_vm0, %v672_v3  ;;  %v360_v5 = vld [vmem:[%s1059_s2 + $0x10] sm:$0xff]  ;;  %v358_v6 = vld [vmem:[%s1059_s2] sm:$0xff]  ;;  %v359_v8 = vld [vmem:[%s1059_s2 + $0x8] sm:$0xff]  ;;  %s230_s24 = scalar_lea.vmem [#allocation6], %s540_s25  ;;  %s554_s27 = sshll.u32 %s422_s20, 6 }
  0x43   : > { %570 = vmatpush3.bf16.msra.mxu0 %v669_v1  ;;  %374 = vperm.xlu0 %667, %v360_v5   ;;  %v673_v9 = vld [vmem:[%s1058_s1 + $0x8] sm:$0xff]   ;;  %s425_s26 = sshll.u32 %s230_s24, 4  ;;  %s1003_s16 = scalar_lea.hbm %s1060_s3, %s554_s27  ;;  %s998_s26 = int_to_ptr.vmem [resolvable:$true] %s425_s26 }
  0x44   : > { %571 = vmatprep.subr.bf16.mxu0 %v670_v2  ;;  %364 = vperm.xlu1 %668, %v358_v6   ;;  %s411_s15 = scalar_lea.sflag [#allocation5], %s967_s11  ;;  %s712_s30 = scalar_lea.vmem %s998_s26, 128 }
  0x45   : > { %p713_p8 = scmp.ne.s32.totalorder %s998_s26, %s712_s30  ;;  %p1067_p9 = scmp.ne.s32.totalorder %s1064_s28, 0 }
  0x46   : > { %s817_s8 = smov [#allocation6]  }
  0x47   : > { %572 = vmatpush3.bf16.msra.mxu0 %v670_v2  ;;  %379 = vperm.xlu0 %667, %v361_v7   ;;  %p714_p12 = pnand %p713_p8, %p1067_p9  ;;  %s716_s10 = sshll.u32 %s817_s8, 4  ;;  %s717_s10 = int_to_ptr.vmem [resolvable:$false] %s716_s10 }
  0x48   : > { %573 = vmatprep.subr.bf16.mxu0 %v671_v4  ;;  %369 = vperm.xlu1 %668, %v359_v8   ;;  %s718_s21 = scalar_lea.vmem %s717_s10, 256  ;;  %p719_p11 = scmp.lt.s32.totalorder %s998_s26, %s717_s10 }
  0x49   : > { %p715_p0 = pneg %p714_p12  ;;  %p720_p13 = scmp.lt.s32.totalorder %s718_s21, %s712_s30 }
  0x4b   : > { %574 = vmatpush3.bf16.msra.mxu0 %v671_v4  ;;  %p721_p1 = por %p720_p13, %p719_p11 }
  0x4d   : > { %p722_p3 = pnand %p721_p1, %p715_p0 }
  0x4e   : > { %576 = vmatmul.mubr.msk.bf16.vlgmr.msra.gmra.mrb[0].mxu0 %vm287_vm0, %v673_v9 }
  0xc2   : > { %v375_v10 = vpop.permute.xlu0 %374 }
  0xc3   : > { %v365_v24 = vpop.permute.xlu1 %364 }
  0xc6   : > { %v380_v14 = vpop.permute.xlu0 %379 }
  0xc7   : > { %v370_v25 = vpop.permute.xlu1 %369 }
 0x121   : > { %v577_v11 = vpop.f32.mrb[0].mxu0 }
 0x122   : > { %v384_v12 = vadd.f32 %v577_v11, %v375_v10  ;;  %v328_v13 = vpop.f32.mrb[1].mxu0 }
 0x123   : > { %v578_v15 = vpop.f32.mrb[2].mxu0  ;;  %v382_v26 = vadd.f32 %v365_v24, %v328_v13 }
 0x124   : > { %v548_v16 = vmul.f32 -1.442695, %v384_v12  ;;  %v385_v17 = vadd.f32 %v578_v15, %v380_v14  ;;  %v331_v18 = vpop.f32.mrb[3].mxu0 }
 0x125   : > { %v383_v29 = vadd.f32 %v370_v25, %v331_v18 }
 0x126   : > { %674 = vpow2.f32 %v548_v16  ;;  %v549_v19 = vmul.f32 -1.442695, %v385_v17 }
 0x128   : > { %676 = vpow2.f32 %v549_v19 }
 0x130   : > { %v675_v20 = vpop.eup %674 }
 0x131   : > { %v392_v21 = vadd.f32 1.0, %v675_v20 }
 0x132   : > { %v677_v22 = vpop.eup %676 }
 0x133   : > { %678 = vrcp.f32 %v392_v21  ;;  %v393_v23 = vadd.f32 1.0, %v677_v22 }
 0x135   : > { %680 = vrcp.f32 %v393_v23 }
 0x13d   : > { %v679_v27 = vpop.eup %678 }
 0x13e   : > { %v398_v28 = vmul.f32 %v679_v27, %v382_v26 }
 0x13f   : > { %v681_v30 = vpop.eup %680 }
 0x140   : > { %v399_v31 = vmul.f32 %v681_v30, %v383_v29 }
 0x142   : > { %v562_v32 = vpack.c.bf16 %v399_v31, %v398_v28 }
 0x144   : > { %563 = vst [vmem:[%s230_s24] sm:$0xff] %v562_v32  }
 0x145   : > { %725 = shalt.err (!%p722_p3)
}
 0x146   : > { %s726_s5 = scalar_lea.hbm %s1003_s16, 128  ;;  %s730_s20 = scalar_lea.hbm %s1060_s3, 512 }
 0x147   : > { %p727_p5 = scmp.ne.s32.totalorder %s1003_s16, %s726_s5  ;;  %p731_p2 = scmp.lt.u32.totalorder %s1003_s16, %s1060_s3 }
 0x148   : > { %p732_p4 = scmp.lt.u32.totalorder %s730_s20, %s726_s5  ;;  %p734_p8 = scmp.lt.u32.totalorder %s726_s5, %s1003_s16 }
 0x149   : > { %p728_p6 = pnand %p727_p5, %p1067_p9 }
 0x14a   : > { %p733_p10 = por %p732_p4, %p731_p2 }
 0x14b   : > { %p729_p7 = pneg %p728_p6 }
 0x14c   : > { %p735_p12 = por %p734_p8, %p733_p10 }
 0x14e   : > { %p736_p0 = pnand %p735_p12, %p729_p7 }
 0x150   : > { %739 = shalt.err (!%p736_p0)
}
 0x151   : > { %s818_s29 = smov 64   ;;  %s819_s7 = smov 128  }
 0x152   : > { %s820_s30 = smov 4  }
 0x153   : > { %584 = dma.vmem_to_hbm [thread:$0]  (%p1067_p9), %s998_s26, 128, %s1003_s16, %s411_s15, %s818_s29, %s819_s7, %s820_s30  }
 0x154 PF: > { %p595_p11 = scmp.ge.s32.totalorder %s810_s19, 2  ;;  %s440_s8 = sand.u32 1, %s782_s12  }
 0x155   : > { %p1068_p13 = scmp.ne.s32.totalorder %s1065_s4, 0  ;;  %s441_s10 = scalar_lea.sflag [#allocation5], %s440_s8 }
 0x157   : > { %p591_p1 = pnand %p595_p11, %p1068_p13 }
 0x159   : > { %777 = dma.done.wait (!%p591_p1), %s441_s10, 128  }
 0x15a   : > { %779 = vsyncadd (!%p591_p1), %s441_s10, 4294967168  ;;  %s19_s19 = sadd.s32 1, %s810_s19   ;;  %s1069_s12 = smov %s786_s13 }
 0x15b   : > { %p16_p3 = scmp.ge.s32.totalorder %s19_s19, 6   ;;  %s1070_s13 = smov %s790_s14 }
 0x15c   : > { %s1071_s14 = smov %s919_s6  ;;  %s1072_s15 = smov %s802_s17 }
 0x15d   : > { %s1073_s16 = smov %s806_s18  ;;  %s1074_s17 = smov %s1077_s22 }
 0x15e   : > { %s1075_s18 = smov %s1081_s23  ;;  %18 = sbr.rel (!%p16_p3) target bundleno = 7 (0x7), region = 88 }
 0x165   :  { %446 = vsyncpa [#allocation4], 1 }
 0x166   :  { %448 = vsyncpa [#allocation4 + $0x1], 1 }
 0x167   :  { %449 = vsyncpa [#allocation5], 1 }
 0x168   :  { %451 = vsyncpa [#allocation5 + $0x1], 1 }

</bundles_post_ra>
